<compile_context>
chip_gen: v6e
topology: v6e:2x2x1
jax: 0.10.0
libtpu: 0.0.40
codegen_flags: <defaults>
</compile_context>

<pallas_src>
import math

import jax
import jax.numpy as jnp
import numpy as np
from jax.experimental import pallas as pl
from jax.experimental.pallas import tpu as pltpu

# ---- module hyper-parameters (CLLDenseModule defaults) ----
ALPHA = 0.9
ALPHAS = 0.85
TAU_M_DT = 1.0 / (1.0 - ALPHA)     # 10
TAU_S_DT = 1.0 / (1.0 - ALPHAS)    # ~6.6667


def _cll_dense_kernel(x_ref, e0p_ref, e1p_ref, w_ref, b_ref,
                      out_ref, pv_ref, vmem_ref, e0n_ref, e1n_ref):
    """One batch tile per grid step.

    x/e0p/e1p refs: (Bt, Cin)   w ref: (Cin, Cout)   b ref: (1, Cout)
    out/pv/vmem:    (Bt, Cout)  e0n/e1n: (Bt, Cin)
    """
    # --- synaptic / membrane trace updates (VPU, elementwise, lane-dense) ---
    eps0 = x_ref[...] * TAU_S_DT + ALPHAS * e0p_ref[...]
    eps1 = ALPHA * e1p_ref[...] + eps0 * TAU_M_DT
    e0n_ref[...] = eps0
    e1n_ref[...] = eps1

    # --- single fused matmul on the MXU; Cout on lanes, f32 accumulation ---
    vmem = jnp.dot(eps1, w_ref[...], preferred_element_type=jnp.float32)
    vmem = vmem + b_ref[...]                       # bias broadcast over rows

    # --- epilogue: membrane potential, sigmoid (EUP), spike threshold (VPU) ---
    vmem_ref[...] = vmem
    pv_ref[...] = jax.nn.sigmoid(vmem)
    out_ref[...] = (vmem > 0).astype(jnp.float32)


def cll_dense_forward(x, state, weight, bias, *, block_b=None):
    """PyTorch-compatible wrapper.

    x: (B, Cin); weight: (Cout, Cin); bias: (Cout,); state = (eps0, eps1) each (B, Cin).
    Returns ((output, pv, vmem), (eps0_new, eps1_new)).
    """
    B, Cin = x.shape
    Cout, _ = weight.shape
    eps0_prev, eps1_prev = state

    f32 = jnp.float32
    # one-time glue: (Cout, Cin) -> (Cin, Cout) so Cout is on the lane axis.
    w_t = jnp.transpose(weight).astype(f32)
    b2 = bias.reshape(1, Cout).astype(f32)

    if block_b is None or block_b >= B:
        block_b = B
    assert B % block_b == 0, "block_b must divide the batch size"
    grid = (B // block_b,)

    in_spec = pl.BlockSpec((block_b, Cin), lambda i: (i, 0))
    out_spec = pl.BlockSpec((block_b, Cout), lambda i: (i, 0))
    w_spec = pl.BlockSpec((Cin, Cout), lambda i: (0, 0))
    b_spec = pl.BlockSpec((1, Cout), lambda i: (0, 0))

    outs = pl.pallas_call(
        _cll_dense_kernel,
        grid=grid,
        in_specs=[in_spec, in_spec, in_spec, w_spec, b_spec],
        out_specs=(out_spec, out_spec, out_spec, in_spec, in_spec),
        out_shape=(
            jax.ShapeDtypeStruct((B, Cout), f32),   # output (spikes)
            jax.ShapeDtypeStruct((B, Cout), f32),   # pv
            jax.ShapeDtypeStruct((B, Cout), f32),   # vmem
            jax.ShapeDtypeStruct((B, Cin), f32),    # new eps0
            jax.ShapeDtypeStruct((B, Cin), f32),    # new eps1
        ),
        compiler_params=pltpu.CompilerParams(dimension_semantics=("parallel",)),
    )(x.astype(f32), eps0_prev.astype(f32), eps1_prev.astype(f32), w_t, b2)

    output, pv, vmem, eps0_new, eps1_new = outs
    return (output, pv, vmem), (eps0_new, eps1_new)


def reference_forward(x, state, weight, bias):
    """Pure-JAX reference (mirrors the PyTorch forward exactly)."""
    eps0_p, eps1_p = state
    eps0 = x * TAU_S_DT + ALPHAS * eps0_p
    eps1 = ALPHA * eps1_p + eps0 * TAU_M_DT
    vmem = jnp.dot(eps1, weight.T, preferred_element_type=jnp.float32) + bias[None, :]
    pv = jax.nn.sigmoid(vmem)
    output = (vmem > 0).astype(jnp.float32)
    return (output, pv, vmem), (eps0, eps1)


if __name__ == "__main__":
    # small, lane-friendly config: batch=8, in_channels=128, out_channels=128
    B, Cin, Cout, T = 8, 128, 128, 3

    # deterministic parameter init, matching reset_parameters():
    #   stdv = 1/sqrt(in_channels); weight ~ U(-stdv*0.01, stdv*0.01); bias ~ U(-stdv, stdv)
    stdv = 1.0 / math.sqrt(Cin)
    key = jax.random.PRNGKey(0)
    kw_key, kb_key, kx_key = jax.random.split(key, 3)
    weight = jax.random.uniform(kw_key, (Cout, Cin), jnp.float32, -stdv * 0.01, stdv * 0.01)
    bias = jax.random.uniform(kb_key, (Cout,), jnp.float32, -stdv, stdv)

    # init_state(): eps0/eps1 zeros of shape (B, in_channels)
    state_k = (jnp.zeros((B, Cin), jnp.float32), jnp.zeros((B, Cin), jnp.float32))
    state_r = state_k

    for t in range(T):
        kx_key, sub = jax.random.split(kx_key)
        x = jax.random.normal(sub, (B, Cin), jnp.float32)

        (out, pv, vmem), state_k = cll_dense_forward(x, state_k, weight, bias)
        jax.block_until_ready((out, pv, vmem) + tuple(state_k))

        (r_out, r_pv, r_vmem), state_r = reference_forward(x, state_r, weight, bias)

        # correctness checks against the pure-JAX reference (every timestep)
        np.testing.assert_allclose(np.asarray(state_k[0]), np.asarray(state_r[0]),
                                   rtol=1e-4, atol=1e-4)
        np.testing.assert_allclose(np.asarray(state_k[1]), np.asarray(state_r[1]),
                                   rtol=1e-4, atol=1e-4)
        np.testing.assert_allclose(np.asarray(vmem), np.asarray(r_vmem),
                                   rtol=1e-3, atol=1e-4)
        np.testing.assert_allclose(np.asarray(pv), np.asarray(r_pv),
                                   rtol=1e-3, atol=1e-4)
        # spike output: compare away from the vmem == 0 decision boundary
        safe = np.abs(np.asarray(r_vmem)) > 1e-2
        np.testing.assert_array_equal(np.asarray(out)[safe], np.asarray(r_out)[safe])

    print("KERNEL_OK")
</pallas_src>

<mosaic_0001>
module attributes {stable_mosaic.version = 11 : i64} {
  func.func @_cll_dense_kernel(%arg0: i32, %arg1: memref<8x128xf32, #tpu.memory_space<vmem>>, %arg2: memref<8x128xf32, #tpu.memory_space<vmem>>, %arg3: memref<8x128xf32, #tpu.memory_space<vmem>>, %arg4: memref<128x128xf32, #tpu.memory_space<vmem>>, %arg5: memref<1x128xf32, #tpu.memory_space<vmem>>, %arg6: memref<8x128xf32, #tpu.memory_space<vmem>>, %arg7: memref<8x128xf32, #tpu.memory_space<vmem>>, %arg8: memref<8x128xf32, #tpu.memory_space<vmem>>, %arg9: memref<8x128xf32, #tpu.memory_space<vmem>>, %arg10: memref<8x128xf32, #tpu.memory_space<vmem>>) attributes {dimension_semantics = [#tpu.dimension_semantics<parallel>], iteration_bounds = array<i64: 1>, scalar_prefetch = 0 : i64, scratch_operands = 0 : i64, tpu.core_type = #tpu.core_type<tc>, window_params = [{transform_indices = @transform_0, window_bounds = array<i64: 8, 128>}, {transform_indices = @transform_1, window_bounds = array<i64: 8, 128>}, {transform_indices = @transform_2, window_bounds = array<i64: 8, 128>}, {pipeline_mode = #tpu.pipeline_mode<synchronous>, transform_indices = @transform_3, window_bounds = array<i64: 128, 128>}, {pipeline_mode = #tpu.pipeline_mode<synchronous>, transform_indices = @transform_4, window_bounds = array<i64: 1, 128>}, {transform_indices = @transform_5, window_bounds = array<i64: 8, 128>}, {transform_indices = @transform_6, window_bounds = array<i64: 8, 128>}, {transform_indices = @transform_7, window_bounds = array<i64: 8, 128>}, {transform_indices = @transform_8, window_bounds = array<i64: 8, 128>}, {transform_indices = @transform_9, window_bounds = array<i64: 8, 128>}]} {
    %c0 = arith.constant 0 : index
    %c0_0 = arith.constant 0 : index
    %0 = vector.load %arg1[%c0, %c0_0] : memref<8x128xf32, #tpu.memory_space<vmem>>, vector<8x128xf32>
    %cst = arith.constant 6.66666651 : f32
    %1 = vector.broadcast %cst : f32 to vector<8x128xf32>
    %2 = arith.mulf %0, %1 : vector<8x128xf32>
    %c0_1 = arith.constant 0 : index
    %c0_2 = arith.constant 0 : index
    %3 = vector.load %arg2[%c0_1, %c0_2] : memref<8x128xf32, #tpu.memory_space<vmem>>, vector<8x128xf32>
    %cst_3 = arith.constant 8.500000e-01 : f32
    %4 = vector.broadcast %cst_3 : f32 to vector<8x128xf32>
    %5 = arith.mulf %4, %3 : vector<8x128xf32>
    %6 = arith.addf %2, %5 : vector<8x128xf32>
    %c0_4 = arith.constant 0 : index
    %c0_5 = arith.constant 0 : index
    %7 = vector.load %arg3[%c0_4, %c0_5] : memref<8x128xf32, #tpu.memory_space<vmem>>, vector<8x128xf32>
    %cst_6 = arith.constant 0.899999976 : f32
    %8 = vector.broadcast %cst_6 : f32 to vector<8x128xf32>
    %9 = arith.mulf %8, %7 : vector<8x128xf32>
    %cst_7 = arith.constant 1.000000e+01 : f32
    %10 = vector.broadcast %cst_7 : f32 to vector<8x128xf32>
    %11 = arith.mulf %6, %10 : vector<8x128xf32>
    %12 = arith.addf %9, %11 : vector<8x128xf32>
    %c0_8 = arith.constant 0 : index
    %c0_9 = arith.constant 0 : index
    %13 = vector.load %arg9[%c0_8, %c0_9] : memref<8x128xf32, #tpu.memory_space<vmem>>, vector<8x128xf32>
    tpu.vector_store %arg9[%c0_8, %c0_9], %6 {strides = array<i32>} : memref<8x128xf32, #tpu.memory_space<vmem>>, vector<8x128xf32>,
    %c0_10 = arith.constant 0 : index
    %c0_11 = arith.constant 0 : index
    %14 = vector.load %arg10[%c0_10, %c0_11] : memref<8x128xf32, #tpu.memory_space<vmem>>, vector<8x128xf32>
    tpu.vector_store %arg10[%c0_10, %c0_11], %12 {strides = array<i32>} : memref<8x128xf32, #tpu.memory_space<vmem>>, vector<8x128xf32>,
    %c0_12 = arith.constant 0 : index
    %c0_13 = arith.constant 0 : index
    %15 = vector.load %arg4[%c0_12, %c0_13] : memref<128x128xf32, #tpu.memory_space<vmem>>, vector<128x128xf32>
    %cst_14 = arith.constant dense<0.000000e+00> : vector<8x128xf32>
    %16 = tpu.matmul %12, %15, %cst_14 {dimension_numbers = #tpu.dot_dimension_numbers<[1], [0], [0], [1], [0, 0, 1, 1], [], []>} : vector<8x128xf32>, vector<128x128xf32>, vector<8x128xf32> -> vector<8x128xf32>
    %c0_15 = arith.constant 0 : index
    %c0_16 = arith.constant 0 : index
    %17 = vector.load %arg5[%c0_15, %c0_16] : memref<1x128xf32, #tpu.memory_space<vmem>>, vector<1x128xf32>
    %18 = vector.broadcast %17 : vector<1x128xf32> to vector<8x128xf32>
    %19 = arith.addf %16, %18 : vector<8x128xf32>
    %c0_17 = arith.constant 0 : index
    %c0_18 = arith.constant 0 : index
    %20 = vector.load %arg8[%c0_17, %c0_18] : memref<8x128xf32, #tpu.memory_space<vmem>>, vector<8x128xf32>
    tpu.vector_store %arg8[%c0_17, %c0_18], %19 {strides = array<i32>} : memref<8x128xf32, #tpu.memory_space<vmem>>, vector<8x128xf32>,
    %21 = arith.negf %19 : vector<8x128xf32>
    %22 = math.exp %21 : vector<8x128xf32>
    %cst_19 = arith.constant 1.000000e+00 : f32
    %23 = vector.broadcast %cst_19 : f32 to vector<8x128xf32>
    %24 = arith.addf %23, %22 : vector<8x128xf32>
    %25 = arith.divf %23, %24 : vector<8x128xf32>
    %c0_20 = arith.constant 0 : index
    %c0_21 = arith.constant 0 : index
    %26 = vector.load %arg7[%c0_20, %c0_21] : memref<8x128xf32, #tpu.memory_space<vmem>>, vector<8x128xf32>
    tpu.vector_store %arg7[%c0_20, %c0_21], %25 {strides = array<i32>} : memref<8x128xf32, #tpu.memory_space<vmem>>, vector<8x128xf32>,
    %cst_22 = arith.constant 0.000000e+00 : f32
    %27 = vector.broadcast %cst_22 : f32 to vector<8x128xf32>
    %28 = arith.cmpf ogt, %19, %27 : vector<8x128xf32>
    %29 = arith.extui %28 : vector<8x128xi1> to vector<8x128xi32>
    %30 = arith.sitofp %29 : vector<8x128xi32> to vector<8x128xf32>
    %c0_23 = arith.constant 0 : index
    %c0_24 = arith.constant 0 : index
    %31 = vector.load %arg6[%c0_23, %c0_24] : memref<8x128xf32, #tpu.memory_space<vmem>>, vector<8x128xf32>
    tpu.vector_store %arg6[%c0_23, %c0_24], %30 {strides = array<i32>} : memref<8x128xf32, #tpu.memory_space<vmem>>, vector<8x128xf32>,
    return
  }
  func.func @transform_0(%arg0: i32) -> (i32, i32) {
    %c0_i32 = arith.constant 0 : i32
    %c0_i32_0 = arith.constant 0 : i32
    return %arg0, %c0_i32 : i32, i32
  }
  func.func @transform_1(%arg0: i32) -> (i32, i32) {
    %c0_i32 = arith.constant 0 : i32
    %c0_i32_0 = arith.constant 0 : i32
    return %arg0, %c0_i32 : i32, i32
  }
  func.func @transform_2(%arg0: i32) -> (i32, i32) {
    %c0_i32 = arith.constant 0 : i32
    %c0_i32_0 = arith.constant 0 : i32
    return %arg0, %c0_i32 : i32, i32
  }
  func.func @transform_3(%arg0: i32) -> (i32, i32) {
    %c0_i32 = arith.constant 0 : i32
    %c0_i32_0 = arith.constant 0 : i32
    %c0_i32_1 = arith.constant 0 : i32
    return %c0_i32, %c0_i32_0 : i32, i32
  }
  func.func @transform_4(%arg0: i32) -> (i32, i32) {
    %c0_i32 = arith.constant 0 : i32
    %c0_i32_0 = arith.constant 0 : i32
    %c0_i32_1 = arith.constant 0 : i32
    return %c0_i32, %c0_i32_0 : i32, i32
  }
  func.func @transform_5(%arg0: i32) -> (i32, i32) {
    %c0_i32 = arith.constant 0 : i32
    %c0_i32_0 = arith.constant 0 : i32
    return %arg0, %c0_i32 : i32, i32
  }
  func.func @transform_6(%arg0: i32) -> (i32, i32) {
    %c0_i32 = arith.constant 0 : i32
    %c0_i32_0 = arith.constant 0 : i32
    return %arg0, %c0_i32 : i32, i32
  }
  func.func @transform_7(%arg0: i32) -> (i32, i32) {
    %c0_i32 = arith.constant 0 : i32
    %c0_i32_0 = arith.constant 0 : i32
    return %arg0, %c0_i32 : i32, i32
  }
  func.func @transform_8(%arg0: i32) -> (i32, i32) {
    %c0_i32 = arith.constant 0 : i32
    %c0_i32_0 = arith.constant 0 : i32
    return %arg0, %c0_i32 : i32, i32
  }
  func.func @transform_9(%arg0: i32) -> (i32, i32) {
    %c0_i32 = arith.constant 0 : i32
    %c0_i32_0 = arith.constant 0 : i32
    return %arg0, %c0_i32 : i32, i32
  }
}

</mosaic_0001>

<bundles_post_ra>
// kernel: tpu_custom_call.1
= control target key start
LH: loop header
LB: loop body
LE: loop exit
PB: predicated region body
PF: predicated region fallthrough
CT: control target
= control target key end

     0   :  { %15 = vsyncpa [#allocation3], 0  ;;  %s639_s0 = inlined_call_operand.hbm [shape: f32[8,128], index: 0, kind: input, shape index: {}]   ;;  %s640_s1 = inlined_call_operand.hbm [shape: f32[8,128], index: 1, kind: input, shape index: {}]   ;;  %s641_s2 = inlined_call_operand.hbm [shape: f32[8,128], index: 2, kind: input, shape index: {}]   ;;  %s642_s3 = inlined_call_operand.hbm [shape: f32[128,128], index: 3, kind: input, shape index: {}]   ;;  %s643_s4 = inlined_call_operand.vmem [shape: f32[1,128], index: 4, kind: input, shape index: {}]   ;;  %s644_s5 = inlined_call_operand.hbm [shape: f32[8,128], index: 5, kind: output, shape index: {0}]   ;;  %s645_s6 = inlined_call_operand.hbm [shape: f32[8,128], index: 6, kind: output, shape index: {1}]   ;;  %s646_s7 = inlined_call_operand.hbm [shape: f32[8,128], index: 7, kind: output, shape index: {2}]   ;;  %s647_s8 = inlined_call_operand.hbm [shape: f32[8,128], index: 8, kind: output, shape index: {3}]   ;;  %s648_s9 = inlined_call_operand.hbm [shape: f32[8,128], index: 9, kind: output, shape index: {4}]  }
   0x1   :  { %16 = vsyncpa [#allocation6], 0 }
   0x2   :  { %17 = vsyncpa [#allocation9], 0 }
   0x3   :  { %18 = vsyncpa [#allocation4], 0 }
   0x4   :  { %19 = vsyncpa [#allocation12], 0 }
   0x5   :  { %20 = vsyncpa [#allocation15], 0  ;;  %s528_s30 = smov [#allocation5]   ;;  %s529_s11 = smov [#allocation2]  }
   0x6   :  { %s37_s10 = sshll.u32 %s528_s30, 4  ;;  %s27_s12 = sshll.u32 %s529_s11, 4  ;;  %s38_s10 = int_to_ptr.vmem [resolvable:$true] %s37_s10  ;;  %s28_s12 = int_to_ptr.vmem [resolvable:$true] %s27_s12 }
   0x7   :  { %s344_s13 = scalar_lea.vmem %s38_s10, 128  ;;  %p349_p1 = scmp.lt.s32.totalorder %s38_s10, %s38_s10 }
   0x8   :  { %p345_p0 = scmp.ne.s32.totalorder %s38_s10, %s344_s13  ;;  %p350_p2 = scmp.lt.s32.totalorder %s344_s13, %s344_s13 }
   0xa   :  { %p351_p3 = por %p350_p2, %p349_p1 }
   0xc   :  { %p352_p4 = pnand %p351_p3, %p345_p0 }
   0xe   :  { %355 = shalt.err (!%p352_p4)
}
   0xf   :  { %40 = dma.hbm_to_vmem [thread:$0]  %s640_s1, 128, %s38_s10, [#allocation6]  }
  0x10   :  { %s364_s16 = scalar_lea.vmem %s28_s12, 128  ;;  %p369_p6 = scmp.lt.s32.totalorder %s28_s12, %s28_s12 }
  0x11   :  { %p365_p5 = scmp.ne.s32.totalorder %s28_s12, %s364_s16  ;;  %p370_p7 = scmp.lt.s32.totalorder %s364_s16, %s364_s16 }
  0x13   :  { %p371_p8 = por %p370_p7, %p369_p6 }
  0x15   :  { %p372_p9 = pnand %p371_p8, %p365_p5 }
  0x17   :  { %375 = shalt.err (!%p372_p9)
}
  0x18   :  { %30 = dma.hbm_to_vmem [thread:$0]  %s639_s0, 128, %s28_s12, [#allocation3]  }
  0x19   :  { %s530_s19 = smov [#allocation7]   ;;  %s531_s21 = smov [#allocation8]  }
  0x1a   :  { %s47_s20 = sshll.u32 %s530_s19, 4  ;;  %s56_s22 = sshll.u32 %s531_s21, 4  ;;  %s48_s20 = int_to_ptr.vmem [resolvable:$true] %s47_s20  ;;  %s57_s22 = int_to_ptr.vmem [resolvable:$true] %s56_s22 }
  0x1b   :  { %s384_s23 = scalar_lea.vmem %s48_s20, 128  ;;  %p389_p11 = scmp.lt.s32.totalorder %s48_s20, %s48_s20 }
  0x1c   :  { %p385_p10 = scmp.ne.s32.totalorder %s48_s20, %s384_s23  ;;  %p390_p12 = scmp.lt.s32.totalorder %s384_s23, %s384_s23 }
  0x1e   :  { %p391_p13 = por %p390_p12, %p389_p11 }
  0x20   :  { %p392_p0 = pnand %p391_p13, %p385_p10 }
  0x22   :  { %395 = shalt.err (!%p392_p0)
}
  0x23   :  { %50 = dma.hbm_to_vmem [thread:$0]  %s641_s2, 128, %s48_s20, [#allocation6]  }
  0x24   :  { %s404_s25 = scalar_lea.vmem %s57_s22, 2048  ;;  %p409_p2 = scmp.lt.s32.totalorder %s57_s22, %s57_s22 }
  0x25   :  { %p405_p1 = scmp.ne.s32.totalorder %s57_s22, %s404_s25  ;;  %p410_p3 = scmp.lt.s32.totalorder %s404_s25, %s404_s25 }
  0x27   :  { %p411_p4 = por %p410_p3, %p409_p2 }
  0x29   :  { %p412_p5 = pnand %p411_p4, %p405_p1 }
  0x2b   :  { %415 = shalt.err (!%p412_p5)
}
  0x2c   :  { %s532_s0 = smov 128   ;;  %s533_s26 = smov 8  }
  0x2d   :  { %62 = dma.hbm_to_vmem [thread:$0]  %s642_s3, 2048, %s57_s22, [#allocation9], %s532_s0, %s532_s0, %s533_s26  }
  0x2e   :  { %516 = dma.done.wait [#allocation3], 128  }
  0x2f   :  { %517 = vsyncadd [#allocation3], 4294967168 }
  0x30   :  { %518 = dma.done.wait [#allocation6], 256  }
  0x31   :  { %519 = vsyncadd [#allocation6], 4294967040 }
  0x32   :  { %520 = dma.done.wait [#allocation9], 2048  }
  0x33   :  { %521 = vsyncadd [#allocation9], 4294965248  ;;  %v534_v0 = vmov 0.0   ;;  %vm535_vm0 = vmmov 0   ;;  %v103_v1 = vld [vmem:[#allocation8 + $0x78] sm:$0xff]  ;;  %v102_v2 = vld [vmem:[#allocation8 + $0x70] sm:$0xff] }
  0x34   :  { %284 = vmatprep.subr.mxu0 %v534_v0  ;;  %316 = vmatprep.mubr.msk.f32.mxu0 %vm535_vm0, %v534_v0  ;;  %v101_v3 = vld [vmem:[#allocation8 + $0x68] sm:$0xff]  ;;  %v100_v4 = vld [vmem:[#allocation8 + $0x60] sm:$0xff]  ;;  %v79_v6 = vld [vmem:[#allocation5] sm:$0xff]  ;;  %s536_s2 = smov [#allocation14]  }
  0x35   :  { %285 = vmatpush3.msra.mxu0 %v103_v1  ;;  %v77_v5 = vld [vmem:[#allocation2] sm:$0xff]  ;;  %v99_v7 = vld [vmem:[#allocation8 + $0x58] sm:$0xff]  ;;  %v80_v9 = vmul.f32 0.85, %v79_v6  ;;  %v98_v11 = vld [vmem:[#allocation8 + $0x50] sm:$0xff]  ;;  %s229_s3 = sshll.u32 %s536_s2, 4  ;;  %s230_s3 = int_to_ptr.vmem [resolvable:$true] %s229_s3 }
  0x36   :  { %286 = vmatprep.subr.mxu0 %v534_v0  ;;  %v78_v8 = vmul.f32 6.6666665, %v77_v5  ;;  %v82_v10 = vld [vmem:[#allocation7] sm:$0xff]  ;;  %v97_v14 = vld [vmem:[#allocation8 + $0x48] sm:$0xff]  ;;  %v96_v16 = vld [vmem:[#allocation8 + $0x40] sm:$0xff]  ;;  %s416_s29 = scalar_lea.vmem %s230_s3, 128  ;;  %p421_p7 = scmp.lt.s32.totalorder %s230_s3, %s230_s3 }
  0x37   :  { %287 = vmatpush3.msra.mxu0 %v102_v2  ;;  %v83_v13 = vmul.f32 0.9, %v82_v10  ;;  %v95_v18 = vld [vmem:[#allocation8 + $0x38] sm:$0xff]  ;;  %v94_v19 = vld [vmem:[#allocation8 + $0x30] sm:$0xff]  ;;  %v93_v20 = vld [vmem:[#allocation8 + $0x28] sm:$0xff]  ;;  %p417_p6 = scmp.ne.s32.totalorder %s230_s3, %s416_s29  ;;  %p422_p8 = scmp.lt.s32.totalorder %s416_s29, %s416_s29 }
  0x38   :  { %288 = vmatprep.subr.mxu0 %v534_v0  ;;  %v81_v12 = vadd.f32 %v80_v9, %v78_v8  ;;  %v92_v21 = vld [vmem:[#allocation8 + $0x20] sm:$0xff]  ;;  %v91_v22 = vld [vmem:[#allocation8 + $0x18] sm:$0xff]  ;;  %v90_v23 = vld [vmem:[#allocation8 + $0x10] sm:$0xff] }
  0x39   :  { %289 = vmatpush3.msra.mxu0 %v101_v3  ;;  %v89_v24 = vld [vmem:[#allocation8 + $0x8] sm:$0xff]  ;;  %v88_v25 = vld [vmem:[#allocation8] sm:$0xff]  ;;  %p423_p9 = por %p422_p8, %p421_p7 }
  0x3a   :  { %290 = vmatprep.subr.mxu0 %v534_v0  ;;  %v84_v15 = vmul.f32 10.0, %v81_v12  ;;  %86 = vst [vmem:[#allocation14] sm:$0xff] %v81_v12 }
  0x3b   :  { %291 = vmatpush3.msra.mxu0 %v100_v4  ;;  %p424_p10 = pnand %p423_p9, %p417_p6 }
  0x3c   :  { %292 = vmatprep.subr.mxu0 %v534_v0  ;;  %v85_v17 = vadd.f32 %v84_v15, %v83_v13 }
  0x3d   :  { %293 = vmatpush3.msra.mxu0 %v99_v7 }
  0x3e   :  { %294 = vmatprep.subr.mxu0 %v534_v0  ;;  %87 = vst [vmem:[#allocation16] sm:$0xff] %v85_v17 }
  0x3f   :  { %295 = vmatpush3.msra.mxu0 %v98_v11 }
  0x40   :  { %296 = vmatprep.subr.mxu0 %v534_v0 }
  0x41   :  { %297 = vmatpush3.msra.mxu0 %v97_v14 }
  0x42   :  { %298 = vmatprep.subr.mxu0 %v534_v0 }
  0x43   :  { %299 = vmatpush3.msra.mxu0 %v96_v16 }
  0x44   :  { %300 = vmatprep.subr.mxu0 %v534_v0 }
  0x45   :  { %301 = vmatpush3.msra.mxu0 %v95_v18 }
  0x46   :  { %302 = vmatprep.subr.mxu0 %v534_v0 }
  0x47   :  { %303 = vmatpush3.msra.mxu0 %v94_v19 }
  0x48   :  { %304 = vmatprep.subr.mxu0 %v534_v0 }
  0x49   :  { %305 = vmatpush3.msra.mxu0 %v93_v20 }
  0x4a   :  { %306 = vmatprep.subr.mxu0 %v534_v0 }
  0x4b   :  { %307 = vmatpush3.msra.mxu0 %v92_v21 }
  0x4c   :  { %308 = vmatprep.subr.mxu0 %v534_v0 }
  0x4d   :  { %309 = vmatpush3.msra.mxu0 %v91_v22 }
  0x4e   :  { %310 = vmatprep.subr.mxu0 %v534_v0 }
  0x4f   :  { %311 = vmatpush3.msra.mxu0 %v90_v23 }
  0x50   :  { %312 = vmatprep.subr.mxu0 %v534_v0 }
  0x51   :  { %313 = vmatpush3.msra.mxu0 %v89_v24 }
  0x52   :  { %314 = vmatprep.subr.mxu0 %v534_v0 }
  0x53   :  { %315 = vmatpush3.msra.mxu0 %v88_v25 }
  0x54   :  { %317 = vmatmul.mubr.f32.vlgmr.msra.gmra.mxu0 %v85_v17 }
  0x55   :  { %427 = shalt.err (!%p424_p10)
}
  0x56   :  { %232 = dma.vmem_to_hbm [thread:$0]  %s230_s3, 128, %s647_s8, [#allocation15]  }
  0x57   :  { %s537_s11 = smov [#allocation16]  }
  0x58   :  { %s239_s12 = sshll.u32 %s537_s11, 4  ;;  %s240_s12 = int_to_ptr.vmem [resolvable:$true] %s239_s12 }
  0x59   :  { %s436_s13 = scalar_lea.vmem %s240_s12, 128  ;;  %p441_p12 = scmp.lt.s32.totalorder %s240_s12, %s240_s12 }
  0x5a   :  { %p437_p11 = scmp.ne.s32.totalorder %s240_s12, %s436_s13  ;;  %p442_p13 = scmp.lt.s32.totalorder %s436_s13, %s436_s13 }
  0x5c   :  { %p443_p0 = por %p442_p13, %p441_p12 }
  0x5e   :  { %p444_p1 = pnand %p443_p0, %p437_p11 }
  0x60   :  { %447 = shalt.err (!%p444_p1)
}
  0x61   :  { %242 = dma.vmem_to_hbm [thread:$0]  %s240_s12, 128, %s648_s9, [#allocation15]   ;;  %v264_v26 = vld [vmem:[%s643_s4] ss:$0 sm:$0xff] }
  0x62   :  { %s538_s8 = smov [#allocation10]  }
  0x63   :  { %s199_s18 = sshll.u32 %s538_s8, 4  ;;  %s200_s18 = int_to_ptr.vmem [resolvable:$true] %s199_s18 }
  0x64   :  { %s456_s19 = scalar_lea.vmem %s200_s18, 128  ;;  %p461_p3 = scmp.lt.s32.totalorder %s200_s18, %s200_s18 }
  0x65   :  { %p457_p2 = scmp.ne.s32.totalorder %s200_s18, %s456_s19  ;;  %p462_p4 = scmp.lt.s32.totalorder %s456_s19, %s456_s19 }
  0x67   :  { %p463_p5 = por %p462_p4, %p461_p3 }
  0x69   :  { %p464_p6 = pnand %p463_p5, %p457_p2 }
 0x114   :  { %v177_v27 = vpop.f32.mrf.mxu0 }
 0x115   :  { %v178_v28 = vadd.f32 %v264_v26, %v177_v27 }
 0x116   :  { %v318_v29 = vpop.f32.mrf.mxu0 }
 0x117   :  { %v265_v30 = vmul.f32 -1.442695, %v178_v28  ;;  %181 = vst [vmem:[#allocation13] sm:$0xff] %v178_v28  ;;  %vm189_vm1 = vcmp.gt.f32.partialorder %v178_v28, 0.0 }
 0x118   :  { %v266_v31 = vsel %vm189_vm1, 1.0, %v534_v0 }
 0x119   :  { %332 = vpow2.f32 %v265_v30  ;;  %192 = vst [vmem:[#allocation10] sm:$0xff] %v266_v31 }
 0x11a   :  { %467 = shalt.err (!%p464_p6)
}
 0x11b   :  { %202 = dma.vmem_to_hbm [thread:$0]  %s200_s18, 128, %s644_s5, [#allocation4]  }
 0x11c   :  { %s539_s20 = smov [#allocation11]   ;;  %s540_s22 = smov [#allocation13]  }
 0x11d   :  { %s209_s21 = sshll.u32 %s539_s20, 4  ;;  %s219_s23 = sshll.u32 %s540_s22, 4  ;;  %s210_s21 = int_to_ptr.vmem [resolvable:$true] %s209_s21  ;;  %s220_s23 = int_to_ptr.vmem [resolvable:$true] %s219_s23 }
 0x11e   :  { %s476_s1 = scalar_lea.vmem %s210_s21, 128  ;;  %p481_p8 = scmp.lt.s32.totalorder %s210_s21, %s210_s21 }
 0x11f   :  { %p477_p7 = scmp.ne.s32.totalorder %s210_s21, %s476_s1  ;;  %p482_p9 = scmp.lt.s32.totalorder %s476_s1, %s476_s1 }
 0x121   :  { %p483_p10 = por %p482_p9, %p481_p8 }
 0x123   :  { %p484_p11 = pnand %p483_p10, %p477_p7 }
 0x126   :  { %v333_v32 = vpop.eup %332 }
 0x127   :  { %v185_v33 = vadd.f32 1.0, %v333_v32 }
 0x129   :  { %334 = vrcp.f32 %v185_v33 }
 0x136   :  { %v335_v34 = vpop.eup %334 }
 0x137   :  { %188 = vst [vmem:[#allocation11] sm:$0xff] %v335_v34 }
 0x138   :  { %487 = shalt.err (!%p484_p11)
}
 0x139   :  { %212 = dma.vmem_to_hbm [thread:$0]  %s210_s21, 128, %s645_s6, [#allocation12]  }
 0x13a   :  { %s496_s25 = scalar_lea.vmem %s220_s23, 128  ;;  %p501_p13 = scmp.lt.s32.totalorder %s220_s23, %s220_s23 }
 0x13b   :  { %p497_p12 = scmp.ne.s32.totalorder %s220_s23, %s496_s25  ;;  %p502_p0 = scmp.lt.s32.totalorder %s496_s25, %s496_s25 }
 0x13d   :  { %p503_p1 = por %p502_p0, %p501_p13 }
 0x13f   :  { %p504_p2 = pnand %p503_p1, %p497_p12 }
 0x141   :  { %507 = shalt.err (!%p504_p2)
}
 0x142   :  { %222 = dma.vmem_to_hbm [thread:$0]  %s220_s23, 128, %s646_s7, [#allocation12]  }
 0x143   :  { %522 = dma.done.wait [#allocation4], 128  }
 0x144   :  { %523 = vsyncadd [#allocation4], 4294967168 }
 0x145   :  { %524 = dma.done.wait [#allocation12], 256  }
 0x146   :  { %525 = vsyncadd [#allocation12], 4294967040 }
 0x147   :  { %526 = dma.done.wait [#allocation15], 256  }
 0x148   :  { %527 = vsyncadd [#allocation15], 4294967040 }
 0x149   :  { %258 = vsyncpa [#allocation3], 1 }
 0x14a   :  { %259 = vsyncpa [#allocation6], 1 }
 0x14b   :  { %260 = vsyncpa [#allocation9], 1 }
 0x14c   :  { %261 = vsyncpa [#allocation4], 1 }
 0x14d   :  { %262 = vsyncpa [#allocation12], 1 }
 0x14e   :  { %263 = vsyncpa [#allocation15], 1 }

</bundles_post_ra>
